<compile_context>
chip_gen: v7x
topology: tpu7x:2x2x1
jax: 0.10.0
libtpu: 0.0.40
codegen_flags: <defaults>
</compile_context>

<pallas_src>
import math
import jax
import jax.numpy as jnp
from jax.experimental import pallas as pl
from jax.experimental.pallas import tpu as pltpu


def _pad_up(v, m):
    return ((v + m - 1) // m) * m


def _static_unit_slope(a):
    """True iff `a` is a compile-time constant in [0, 1] (enables max-form PReLU)."""
    try:
        v = float(a)
    except Exception:   # traced value -> must keep the where() form
        return False
    return 0.0 <= v <= 1.0


def _make_lru_kernel(apply_stage1, max1, max2):
    """Build the kernel, specialized on static choices (stage-1 on/off, PReLU form)."""

    def kernel(a_ref, x_ref, s1_ref, t1_ref, w_ref, t2_ref, o_ref):
        # a_ref  : SMEM (2,)         [a1, a2] PReLU slopes
        # x_ref  : VMEM (1, C, t_hw) input block (channels on sublanes, HW on lanes)
        # s1_ref : VMEM (C, 1)       folded dwconv*BN1 scale
        # t1_ref : VMEM (C, 1)       folded dwconv*BN1 shift
        # w_ref  : VMEM (O, C)       pointwise weight with BN2 scale folded in
        # t2_ref : VMEM (O, 1)       folded (ptconv bias + BN2) shift
        # o_ref  : VMEM (1, O, t_hw) output block (already NCHW layout)
        x = x_ref[0].astype(jnp.float32)                      # (C, t_hw); free for f32 input

        if apply_stage1:
            a1 = a_ref[0]
            y = x * s1_ref[...] + t1_ref[...]                 # per-channel affine
            y = jnp.maximum(y, a1 * y) if max1 else jnp.where(y > 0, y, a1 * y)
        else:
            y = x                                             # LRU branch disabled

        a2 = a_ref[1]
        # 1x1 pointwise conv on the MXU; K=C is tiny, the op is memory-bound anyway.
        z = jnp.dot(w_ref[...], y, preferred_element_type=jnp.float32)   # (O, t_hw)
        z = z + t2_ref[...]
        z = jnp.maximum(z, a2 * z) if max2 else jnp.where(z > 0, z, a2 * z)
        o_ref[0] = z.astype(o_ref.dtype)                      # cast only at the store

    return kernel


def local_refinement_units(x_nchw, params, *, choice=True, tile_hw=2048, out_dtype=None):
    """Forward pass of LocalRefinementUnits (eval-mode BN).

    x_nchw:   (N, C, H, W)
    params:   dict of deterministic parameters (see make_params).
    tile_hw:  HW tile size (lane axis). Sweep 2048-8192 on v5e/v6e (128 MiB VMEM);
              the wrapper clamps to a VMEM budget so v7x (64 MiB/TC) stays safe.
    out_dtype: None -> same as input dtype. Pass jnp.bfloat16 to halve output HBM
              bytes (the output is ~out_dim/C times larger than the input).
    Returns (N, out_dim, H, W) in out_dtype.
    """
    N, C, H, W = x_nchw.shape
    HW = H * W
    O = params["w_pt"].shape[0]
    eps = 1e-5

    in_dtype = jnp.dtype(x_nchw.dtype)
    out_dtype = in_dtype if out_dtype is None else jnp.dtype(out_dtype)

    # ---- fold parameters (plain JAX glue) ----
    inv1 = params["bn1_gamma"] / jnp.sqrt(params["bn1_var"] + eps)               # (C,)
    s1 = (params["w_dw"] * inv1).astype(jnp.float32)                             # (C,)
    t1 = ((params["b_dw"] - params["bn1_mean"]) * inv1
          + params["bn1_beta"]).astype(jnp.float32)                              # (C,)

    inv2 = params["bn2_gamma"] / jnp.sqrt(params["bn2_var"] + eps)               # (O,)
    # BN2 scale folded straight into the pointwise weight (saves one (O,t_hw) VPU mul
    # per tile and one lane-padded (O,1) VMEM operand).
    w_mat = (params["w_pt"].reshape(O, C).astype(jnp.float32) * inv2[:, None])   # (O, C)
    t2 = ((params["b_pt"] - params["bn2_mean"]) * inv2
          + params["bn2_beta"]).astype(jnp.float32)                              # (O,)

    a1 = params["prelu1"] if choice else jnp.float32(1.0)
    a2 = params["prelu2"]
    max1 = bool(choice) and _static_unit_slope(a1)   # max-form PReLU only valid for 0<=a<=1
    max2 = _static_unit_slope(a2)

    # ---- NCHW-native view: free reshape, no copy, no wrapper-side dtype pass ----
    x3 = x_nchw.reshape(N, C, HW)

    # ---- VMEM-budgeted HW tile (lane axis) ----
    try:
        vmem_cap = int(pltpu.get_tpu_info().vmem_capacity_bytes)
    except Exception:
        vmem_cap = 64 << 20    # conservative fallback (v7x per-TC VMEM)

    O_pad = _pad_up(O, 8)
    C_pad = _pad_up(C, 8)
    in_b = in_dtype.itemsize
    out_b = out_dtype.itemsize

    budget = int(vmem_cap * 0.45)                       # headroom for invariants + scratch
    per_col = 2 * (O_pad * out_b + C_pad * in_b)        # double-buffered bytes / HW column
    t_fit = max((budget // per_col) // 128 * 128, 128)

    t_hw = max((min(int(tile_hw), t_fit) // 128) * 128, 128)
    if HW <= t_hw:
        t_hw = HW                                       # full extent (may be <128-aligned)
    # Megacore: v7x shards "parallel" grid axes over 2 TensorCores -> keep >=2 blocks.
    if N * pl.cdiv(HW, t_hw) < 2 and HW >= 256:
        t_hw = max(_pad_up(pl.cdiv(HW, 2), 128), 128)
    n_hw = pl.cdiv(HW, t_hw)    # cdiv grid: ragged last block is masked on store

    a_scalars = jnp.stack([jnp.asarray(a1, jnp.float32),
                           jnp.asarray(a2, jnp.float32)])                        # (2,)
    s1_c = s1.reshape(C, 1)
    t1_c = t1.reshape(C, 1)
    t2_c = t2.reshape(O, 1)

    # VMEM estimate from *padded* tile sizes (last dim -> 128, second-to-last -> 8).
    t_lanes = _pad_up(t_hw, 128)
    vmem_needed = (2 * C_pad * t_lanes * in_b           # x double-buffer
                   + 2 * O_pad * t_lanes * out_b        # out double-buffer
                   + 2 * 2 * O_pad * 128 * 4            # w (O,C) + t2 (O,1), lane-padded
                   + 2 * 2 * 8 * 128 * 4)               # s1, t1
    vmem_limit = int(min(max(int(1.3 * vmem_needed), 32 << 20), int(vmem_cap * 0.9)))

    kernel = _make_lru_kernel(bool(choice), max1, max2)

    out3 = pl.pallas_call(
        kernel,
        out_shape=jax.ShapeDtypeStruct((N, O, HW), out_dtype),
        grid_spec=pltpu.PrefetchScalarGridSpec(
            num_scalar_prefetch=0,
            grid=(N, n_hw),
            in_specs=[
                pl.BlockSpec(memory_space=pltpu.MemorySpace.SMEM),      # a_scalars (8 B)
                pl.BlockSpec((1, C, t_hw), lambda n, j: (n, 0, j)),     # x block
                pl.BlockSpec((C, 1), lambda n, j: (0, 0)),              # s1
                pl.BlockSpec((C, 1), lambda n, j: (0, 0)),              # t1
                pl.BlockSpec((O, C), lambda n, j: (0, 0)),              # w (BN2 scale folded)
                pl.BlockSpec((O, 1), lambda n, j: (0, 0)),              # t2
            ],
            out_specs=pl.BlockSpec((1, O, t_hw), lambda n, j: (n, 0, j)),
        ),
        compiler_params=pltpu.CompilerParams(
            dimension_semantics=("parallel", "parallel"),
            vmem_limit_bytes=vmem_limit),
    )(a_scalars, x3, s1_c, t1_c, w_mat, t2_c)

    return out3.reshape(N, O, H, W)   # free reshape; output already NCHW


def make_params(key, dim, out_dim):
    """Deterministic parameter init mirroring the PyTorch module's shapes."""
    ks = jax.random.split(key, 8)
    return {
        # dwconv: Conv2d(dim, dim, 1, groups=dim) -> weight (dim,1,1,1), bias (dim,)
        "w_dw": jax.random.normal(ks[0], (dim,), jnp.float32) * 0.5,
        "b_dw": jax.random.normal(ks[1], (dim,), jnp.float32) * 0.1,
        # bn1
        "bn1_gamma": 1.0 + 0.1 * jax.random.normal(ks[2], (dim,), jnp.float32),
        "bn1_beta": 0.05 * jax.random.normal(ks[3], (dim,), jnp.float32),
        "bn1_mean": 0.02 * jax.random.normal(ks[4], (dim,), jnp.float32),
        "bn1_var": jnp.abs(jax.random.normal(ks[5], (dim,), jnp.float32)) + 0.5,
        # ptconv: Conv2d(dim, out_dim, 1) -> weight (out_dim, dim, 1, 1), bias (out_dim,)
        "w_pt": (jax.random.normal(ks[6], (out_dim, dim, 1, 1), jnp.float32)
                 / math.sqrt(dim)),
        "b_pt": 0.1 * jax.random.normal(ks[7], (out_dim,), jnp.float32),
        # bn2
        "bn2_gamma": jnp.linspace(0.8, 1.2, out_dim, dtype=jnp.float32),
        "bn2_beta": jnp.linspace(-0.1, 0.1, out_dim, dtype=jnp.float32),
        "bn2_mean": jnp.linspace(-0.05, 0.05, out_dim, dtype=jnp.float32),
        "bn2_var": jnp.linspace(0.5, 1.5, out_dim, dtype=jnp.float32),
        # PReLU(num_parameters=1), default init 0.25
        "prelu1": jnp.float32(0.25),
        "prelu2": jnp.float32(0.25),
    }


def _reference(x_nchw, params, choice=True):
    """Pure-JAX reference (eval-mode BN), NCHW semantics."""
    eps = 1e-5
    x = x_nchw
    if choice:
        y = x * params["w_dw"][None, :, None, None] + params["b_dw"][None, :, None, None]
        y = ((y - params["bn1_mean"][None, :, None, None])
             / jnp.sqrt(params["bn1_var"][None, :, None, None] + eps)
             * params["bn1_gamma"][None, :, None, None]
             + params["bn1_beta"][None, :, None, None])
        y = jnp.where(y > 0, y, params["prelu1"] * y)
        x = y
    O, C = params["w_pt"].shape[:2]
    w = params["w_pt"].reshape(O, C)
    z = jnp.einsum("nchw,oc->nohw", x, w) + params["b_pt"][None, :, None, None]
    z = ((z - params["bn2_mean"][None, :, None, None])
         / jnp.sqrt(params["bn2_var"][None, :, None, None] + eps)
         * params["bn2_gamma"][None, :, None, None]
         + params["bn2_beta"][None, :, None, None])
    z = jnp.where(z > 0, z, params["prelu2"] * z)
    return z


if __name__ == "__main__":
    key = jax.random.PRNGKey(0)
    k_x, k_p = jax.random.split(key)

    N, C, H, W = 2, 4, 16, 16
    OUT_DIM = 128  # small stand-in for 768

    x = jax.random.normal(k_x, (N, C, H, W), jnp.float32)
    params = make_params(k_p, C, OUT_DIM)
    ref = _reference(x, params, choice=True)

    # f32 output path (out_dtype follows input dtype).
    out = jax.block_until_ready(local_refinement_units(x, params, choice=True))
    assert out.shape == (N, OUT_DIM, H, W)
    assert out.dtype == jnp.float32
    assert jnp.allclose(out, ref, atol=1e-4, rtol=1e-4)

    # bf16 output path (halves the dominant output HBM traffic; cast only at the store).
    out_bf16 = jax.block_until_ready(
        local_refinement_units(x, params, choice=True, out_dtype=jnp.bfloat16))
    assert out_bf16.dtype == jnp.bfloat16
    assert jnp.allclose(out_bf16.astype(jnp.float32), ref, atol=5e-2, rtol=5e-2)

    # LRU-disabled branch (stage 1 skipped entirely in the specialized kernel).
    out_nolru = jax.block_until_ready(local_refinement_units(x, params, choice=False))
    ref_nolru = _reference(x, params, choice=False)
    assert jnp.allclose(out_nolru, ref_nolru, atol=1e-4, rtol=1e-4)

    print("KERNEL_OK")
</pallas_src>

<mosaic_0001>
module attributes {stable_mosaic.version = 11 : i64} {
  func.func @kernel(%arg0: i32, %arg1: i32, %arg2: memref<2xf32, #tpu.memory_space<smem>>, %arg3: memref<1x4x256xf32, #tpu.memory_space<vmem>>, %arg4: memref<4x1xf32, #tpu.memory_space<vmem>>, %arg5: memref<4x1xf32, #tpu.memory_space<vmem>>, %arg6: memref<128x4xf32, #tpu.memory_space<vmem>>, %arg7: memref<128x1xf32, #tpu.memory_space<vmem>>, %arg8: memref<1x128x256xf32, #tpu.memory_space<vmem>>) attributes {dimension_semantics = [#tpu.dimension_semantics<parallel>, #tpu.dimension_semantics<parallel>], iteration_bounds = array<i64: 2, 1>, scalar_prefetch = 0 : i64, scratch_operands = 0 : i64, tpu.core_type = #tpu.core_type<tc>, window_params = [{transform_indices = @transform_0, window_bounds = array<i64: 2>}, {transform_indices = @transform_1, window_bounds = array<i64: 1, 4, 256>}, {pipeline_mode = #tpu.pipeline_mode<synchronous>, transform_indices = @transform_2, window_bounds = array<i64: 4, 1>}, {pipeline_mode = #tpu.pipeline_mode<synchronous>, transform_indices = @transform_3, window_bounds = array<i64: 4, 1>}, {pipeline_mode = #tpu.pipeline_mode<synchronous>, transform_indices = @transform_4, window_bounds = array<i64: 128, 4>}, {pipeline_mode = #tpu.pipeline_mode<synchronous>, transform_indices = @transform_5, window_bounds = array<i64: 128, 1>}, {transform_indices = @transform_6, window_bounds = array<i64: 1, 128, 256>}]} {
    %c0 = arith.constant 0 : index
    %c0_0 = arith.constant 0 : index
    %c0_1 = arith.constant 0 : index
    %0 = vector.load %arg3[%c0, %c0_0, %c0_1] : memref<1x4x256xf32, #tpu.memory_space<vmem>>, vector<1x4x256xf32>
    %1 = vector.shape_cast %0 : vector<1x4x256xf32> to vector<4x256xf32>
    %c0_2 = arith.constant 0 : index
    %2 = memref.load %arg2[%c0_2] : memref<2xf32, #tpu.memory_space<smem>>
    %c0_3 = arith.constant 0 : index
    %c0_4 = arith.constant 0 : index
    %3 = vector.load %arg4[%c0_3, %c0_4] : memref<4x1xf32, #tpu.memory_space<vmem>>, vector<4x1xf32>
    %4 = vector.broadcast %3 : vector<4x1xf32> to vector<4x256xf32>
    %5 = arith.mulf %1, %4 : vector<4x256xf32>
    %c0_5 = arith.constant 0 : index
    %c0_6 = arith.constant 0 : index
    %6 = vector.load %arg5[%c0_5, %c0_6] : memref<4x1xf32, #tpu.memory_space<vmem>>, vector<4x1xf32>
    %7 = vector.broadcast %6 : vector<4x1xf32> to vector<4x256xf32>
    %8 = arith.addf %5, %7 : vector<4x256xf32>
    %9 = vector.broadcast %2 : f32 to vector<4x256xf32>
    %10 = arith.mulf %9, %8 : vector<4x256xf32>
    %11 = arith.maximumf %8, %10 : vector<4x256xf32>
    %c1 = arith.constant 1 : index
    %12 = memref.load %arg2[%c1] : memref<2xf32, #tpu.memory_space<smem>>
    %c0_7 = arith.constant 0 : index
    %c0_8 = arith.constant 0 : index
    %13 = vector.load %arg6[%c0_7, %c0_8] : memref<128x4xf32, #tpu.memory_space<vmem>>, vector<128x4xf32>
    %cst = arith.constant dense<0.000000e+00> : vector<128x256xf32>
    %14 = tpu.matmul %13, %11, %cst {dimension_numbers = #tpu.dot_dimension_numbers<[1], [0], [0], [1], [0, 0, 1, 1], [], []>} : vector<128x4xf32>, vector<4x256xf32>, vector<128x256xf32> -> vector<128x256xf32>
    %c0_9 = arith.constant 0 : index
    %c0_10 = arith.constant 0 : index
    %15 = vector.load %arg7[%c0_9, %c0_10] : memref<128x1xf32, #tpu.memory_space<vmem>>, vector<128x1xf32>
    %16 = vector.broadcast %15 : vector<128x1xf32> to vector<128x256xf32>
    %17 = arith.addf %14, %16 : vector<128x256xf32>
    %18 = vector.broadcast %12 : f32 to vector<128x256xf32>
    %19 = arith.mulf %18, %17 : vector<128x256xf32>
    %20 = arith.maximumf %17, %19 : vector<128x256xf32>
    %c0_11 = arith.constant 0 : index
    %c0_12 = arith.constant 0 : index
    %c0_13 = arith.constant 0 : index
    %21 = vector.load %arg8[%c0_11, %c0_12, %c0_13] : memref<1x128x256xf32, #tpu.memory_space<vmem>>, vector<1x128x256xf32>
    %22 = vector.shape_cast %21 : vector<1x128x256xf32> to vector<128x256xf32>
    %23 = vector.shape_cast %20 : vector<128x256xf32> to vector<1x128x256xf32>
    tpu.vector_store %arg8[%c0_11, %c0_12, %c0_13], %23 {strides = array<i32>} : memref<1x128x256xf32, #tpu.memory_space<vmem>>, vector<1x128x256xf32>,
    return
  }
  func.func @transform_0(%arg0: i32, %arg1: i32) -> i32 {
    %c0_i32 = arith.constant 0 : i32
    %c0_i32_0 = arith.constant 0 : i32
    return %c0_i32 : i32
  }
  func.func @transform_1(%arg0: i32, %arg1: i32) -> (i32, i32, i32) {
    %c0_i32 = arith.constant 0 : i32
    %c0_i32_0 = arith.constant 0 : i32
    return %arg0, %c0_i32, %arg1 : i32, i32, i32
  }
  func.func @transform_2(%arg0: i32, %arg1: i32) -> (i32, i32) {
    %c0_i32 = arith.constant 0 : i32
    %c0_i32_0 = arith.constant 0 : i32
    %c0_i32_1 = arith.constant 0 : i32
    return %c0_i32, %c0_i32_0 : i32, i32
  }
  func.func @transform_3(%arg0: i32, %arg1: i32) -> (i32, i32) {
    %c0_i32 = arith.constant 0 : i32
    %c0_i32_0 = arith.constant 0 : i32
    %c0_i32_1 = arith.constant 0 : i32
    return %c0_i32, %c0_i32_0 : i32, i32
  }
  func.func @transform_4(%arg0: i32, %arg1: i32) -> (i32, i32) {
    %c0_i32 = arith.constant 0 : i32
    %c0_i32_0 = arith.constant 0 : i32
    %c0_i32_1 = arith.constant 0 : i32
    return %c0_i32, %c0_i32_0 : i32, i32
  }
  func.func @transform_5(%arg0: i32, %arg1: i32) -> (i32, i32) {
    %c0_i32 = arith.constant 0 : i32
    %c0_i32_0 = arith.constant 0 : i32
    %c0_i32_1 = arith.constant 0 : i32
    return %c0_i32, %c0_i32_0 : i32, i32
  }
  func.func @transform_6(%arg0: i32, %arg1: i32) -> (i32, i32, i32) {
    %c0_i32 = arith.constant 0 : i32
    %c0_i32_0 = arith.constant 0 : i32
    return %arg0, %c0_i32, %arg1 : i32, i32, i32
  }
}

</mosaic_0001>

<bundles_post_ra>
// kernel: tpu_custom_call.1
= control target key start
LH: loop header
LB: loop body
LE: loop exit
PB: predicated region body
PF: predicated region fallthrough
CT: control target
= control target key end

     0   :  { %11 = vsyncpa [#allocation4], 0  ;;  %s1477_s0 = inlined_call_operand.vmem [shape: f32[2], index: 0, kind: input, shape index: {}]   ;;  %s1478_s1 = inlined_call_operand.vmem [shape: f32[2,4,256], index: 1, kind: input, shape index: {}]   ;;  %s1479_s2 = inlined_call_operand.vmem [shape: f32[4,1], index: 2, kind: input, shape index: {}]   ;;  %s1480_s3 = inlined_call_operand.vmem [shape: f32[4,1], index: 3, kind: input, shape index: {}]   ;;  %s1481_s4 = inlined_call_operand.vmem [shape: f32[128,4], index: 4, kind: input, shape index: {}]   ;;  %s1482_s5 = inlined_call_operand.vmem [shape: f32[128,1], index: 5, kind: input, shape index: {}]   ;;  %s1483_s6 = inlined_call_operand.hbm [shape: f32[2,128,256], index: 6, kind: output, shape index: {}]  }
   0x1   :  { %12 = vsyncpa [#allocation3], 0 }
   0x2   :  { %14 = vsyncpa [#allocation3 + $0x1], 0  ;;  %s1114_s21 = smov 0   ;;  %s1116_s22 = smov 0  }
   0x3   :  { %s1118_s23 = smov 0   ;;  %s1120_s24 = smov 0  }
   0x4   :  { %s1122_s25 = smov 0   ;;  %s1124_s26 = smov 0  }
   0x5 LB: > { %s862_s27 = sadd.s32 4294967295, %s1070_s26   ;;  %s863_s28 = sadd.s32 4294967294, %s1070_s26   ;;  %s1070_s26 = sphi %s1124_s26, %s20_s26   ;;  %s1066_s25 = sphi %s1122_s25, %s1492_s25   ;;  %s1062_s24 = sphi %s1120_s24, %s1491_s24   ;;  %s1058_s23 = sphi %s1118_s23, %s1490_s23   ;;  %s1054_s22 = sphi %s1116_s22, %s1489_s22   ;;  %s1050_s21 = sphi %s1114_s21, %s1488_s21  }
   0x6   : > { %s32_s29 = sadd.s32 1, %s1066_s25  ;;  %s174_s30 = sadd.s32 1, %s1058_s23 }
   0x7   : > { %p34_p0 = scmp.ge.s32.totalorder %s32_s29, 2  ;;  %p184_p1 = scmp.ne.s32.totalorder %s1058_s23, %s1054_s22 }
   0x8   : > { %p185_p2 = scmp.eq.s32.totalorder %s862_s27, 1  ;;  %p190_p3 = scmp.ne.s32.totalorder %s1054_s22, %s1050_s21 }
   0x9   : > { %s1494_s29 = smov (%p34_p0, %s32_s29), 0  ;;  %p191_p5 = scmp.eq.s32.totalorder %s863_s28, 1 }
   0xa   : > { %p1154_p4 = por %p185_p2, %p184_p1  ;;  %s169_s8 = ssub.s32 %s1066_s25, %s1494_s29 }
   0xb   : > { %p864_p6 = scmp.ge.s32.totalorder %s1070_s26, 1  ;;  %p172_p7 = scmp.eq.s32.totalorder %s169_s8, 0 }
   0xc   : > { %p1161_p8 = por %p191_p5, %p190_p3  ;;  %p198_p9 = scmp.lt.s32.totalorder %s1070_s26, 3 }
   0xd   : > { %s1167_s10 = scalar_select %p172_p7, %s1058_s23, %s174_s30  }
   0xe   : > { %p1169_p10 = pnand %p864_p6, %p198_p9  ;;  %p1173_p11 = scmp.eq.s32.totalorder %s862_s27, 0 }
   0xf   : > { %s211_s15 = sshll.u32 %s1477_s0, 4  ;;  %s212_s15 = int_to_ptr.vmem [resolvable:$true] %s211_s15 }
  0x10   : > { %p906_p12 = pneg %p1169_p10  ;;  %s973_s16 = scalar_lea.vmem %s212_s15, 16 }
  0x11   : > { %p974_p0 = scmp.ne.s32.totalorder %s212_s15, %s973_s16  ;;  %p981_p5 = scmp.lt.s32.totalorder %s212_s15, %s212_s15 }
  0x12   : > { %p907_p13 = pnand %p1173_p11, %p906_p12  ;;  %p982_p6 = scmp.lt.s32.totalorder %s973_s16, %s973_s16 }
  0x14   : > { %p975_p1 = pneg %p907_p13  ;;  %p983_p7 = por %p982_p6, %p981_p5 }
  0x16   : > { %p976_p2 = pnand %p975_p1, %p974_p0 }
  0x18   : > { %p977_p3 = pneg %p976_p2 }
  0x1a   : > { %p984_p9 = pnand %p983_p7, %p977_p3 }
  0x1c   : > { %987 = shalt.err (!%p984_p9)
}
  0x1d   : > { %s1072_s17 = smov [#allocation2]   ;;  %249 = sbr.rel (%p1169_p10) target bundleno = 447 (0x1bf), region = 44 }
  0x1e   : > { %909 = dma.vmem_to_smem (!%p907_p13), %s212_s15, 16, %s1072_s17, [#allocation4]  }
  0x24   : > { %1041 = dma.done.wait (%p1173_p11), [#allocation4], 16  }
  0x25   : > { %1043 = vsyncadd (%p1173_p11), [#allocation4], 4294967280 }
  0x26   : > { %255 = sfence }
  0x27   : > { %v297_v0 = vld [vmem:[%s1479_s2] sm:$0xf]  ;;  %v1073_v1 = vmov 0   ;;  %v347_v3 = vld [vmem:[%s1482_s5 + $0x10] sm:$0xff]  ;;  %v1074_v6 = vmov 0.0   ;;  %v346_v12 = vld [vmem:[%s1482_s5 + $0x8] sm:$0xff]  ;;  %v305_v22 = vlaneseq }
  0x28   : > { %971 = vset.pattern.permute.xlu0 %v1073_v1  ;;  %972 = vset.pattern.permute.xlu1 %v1073_v1  ;;  %v311_v2 = vld [vmem:[%s1480_s3] sm:$0xf]  ;;  %v351_v5 = vld [vmem:[%s1482_s5 + $0x30] sm:$0xff]  ;;  %v348_v13 = vld [vmem:[%s1482_s5 + $0x18] sm:$0xff]  ;;  %p285_p10 = scmp.lt.s32.totalorder %s1062_s24, 1  ;;  %s296_s14 = sld [smem:[#allocation2]] }
  0x29   : > { %300 = vperm.xlu0 %971, %v297_v0   ;;  %v349_v4 = vld [vmem:[%s1482_s5 + $0x20] sm:$0xff]  ;;  %561 = vmatprep.mubr.f32.mxu0 %v1074_v6  ;;  %v355_v8 = vld [vmem:[%s1482_s5 + $0x50] sm:$0xff]  ;;  %v350_v14 = vld [vmem:[%s1482_s5 + $0x28] sm:$0xff]  ;;  %v1075_v20 = vmov 839922192   ;;  %v306_v24 = vshrl.u32 %v305_v22, 7 }
  0x2a   : > { %609 = vmatprep.mubr.f32.mxu1 %v1074_v6  ;;  %v353_v7 = vld [vmem:[%s1482_s5 + $0x40] sm:$0xff]  ;;  %v359_v10 = vld [vmem:[%s1482_s5 + $0x70] sm:$0xff]  ;;  %v352_v15 = vld [vmem:[%s1482_s5 + $0x38] sm:$0xff]  ;;  %v303_v21 = vunpack.c.l.s4 %v1075_v20  ;;  %s286_s12 = scalar_select %p285_p10, %s1062_s24, 1  ;;  %vm492_vm0 = vcmask 1043456   ;;  %vm443_vm1 = vcmask 31744  }
  0x2b   : > { %v357_v9 = vld [vmem:[%s1482_s5 + $0x60] sm:$0xff]  ;;  %v354_v16 = vld [vmem:[%s1482_s5 + $0x48] sm:$0xff]  ;;  %v356_v17 = vld [vmem:[%s1482_s5 + $0x58] sm:$0xff]  ;;  %s872_s28 = sld [smem:[#allocation2 + $0x1]]  ;;  %s281_s30 = sand.u32 1, %s1054_s22  }
  0x2c   : > { %v345_v11 = vld [vmem:[%s1482_s5] sm:$0xff]  ;;  %v358_v18 = vld [vmem:[%s1482_s5 + $0x68] sm:$0xff]  ;;  %v360_v19 = vld [vmem:[%s1482_s5 + $0x78] sm:$0xff]  ;;  %v304_v23 = vunpack.c.0.s8 %v303_v21  ;;  %s896_s13 = sshll.u32 %s286_s12, 3  ;;  %s869_s8 = sshll.u32 %s281_s30, 8 }
  0x2d   : > { %314 = vperm.xlu0 %971, %v311_v2   ;;  %363 = vperm.xlu1 %972, %v345_v11   ;;  %s292_s17 = scalar_lea.vmem %s1478_s1, %s896_s13  ;;  %v329_v37 = vld [vmem:[%s1481_s4] sm:$0xff]  ;;  %v330_v39 = vld [vmem:[%s1481_s4 + $0x8] sm:$0xff]  ;;  %v331_v41 = vld [vmem:[%s1481_s4 + $0x10] sm:$0xff]  ;;  %s1348_s11 = scalar_lea.vmem [#allocation5], %s869_s8 }
  0x2e   : > { %v307_v25 = vsub.s32 %v304_v23, %v306_v24  ;;  %v295_v28 = vld [vmem:[%s292_s17] sm:$0xff]  ;;  %v325_v32 = vstv %s296_s14  ;;  %v338_v40 = vld [vmem:[%s1481_s4 + $0x48] sm:$0xff]  ;;  %v339_v42 = vld [vmem:[%s1481_s4 + $0x50] sm:$0xff]  ;;  %s897_s12 = sshll.u32 %s1062_s24, 12  ;;  %s771_s13 = sshll.u32 %s1348_s11, 4  ;;  %s1423_s13 = int_to_ptr.vmem [resolvable:$true] %s771_s13 }
  0x2f   : > { %v337_v38 = vld [vmem:[%s1481_s4 + $0x40] sm:$0xff]  ;;  %v332_v43 = vld [vmem:[%s1481_s4 + $0x18] sm:$0xff]  ;;  %v334_v47 = vld [vmem:[%s1481_s4 + $0x28] sm:$0xff]  ;;  %s1421_s15 = scalar_lea.hbm %s1483_s6, %s897_s12  ;;  %s1431_s16 = scalar_lea.sflag [#allocation3], %s281_s30 }
  0x30   : > { %v340_v44 = vld [vmem:[%s1481_s4 + $0x58] sm:$0xff]  ;;  %v333_v45 = vld [vmem:[%s1481_s4 + $0x20] sm:$0xff]  ;;  %v342_v48 = vld [vmem:[%s1481_s4 + $0x68] sm:$0xff]  ;;  %s988_s17 = scalar_lea.vmem %s1423_s13, 4096  ;;  %s1076_s18 = smov [#allocation5]  }
  0x31   : > { %373 = vperm.xlu0 %971, %v347_v3   ;;  %368 = vperm.xlu1 %972, %v346_v12   ;;  %v341_v46 = vld [vmem:[%s1481_s4 + $0x60] sm:$0xff]  ;;  %v335_v49 = vld [vmem:[%s1481_s4 + $0x30] sm:$0xff]  ;;  %v336_v51 = vld [vmem:[%s1481_s4 + $0x38] sm:$0xff]  ;;  %v1340_v63 = vstv %s872_s28  ;;  %p989_p11 = scmp.ne.s32.totalorder %s1423_s13, %s988_s17  ;;  %s992_s19 = sshll.u32 %s1076_s18, 4  ;;  %s993_s19 = int_to_ptr.vmem [resolvable:$false] %s992_s19 }
  0x32   : > { %v343_v50 = vld [vmem:[%s1481_s4 + $0x70] sm:$0xff]  ;;  %v344_v52 = vld [vmem:[%s1481_s4 + $0x78] sm:$0xff]  ;;  %s994_s20 = scalar_lea.vmem %s993_s19, 8192  ;;  %p995_p0 = scmp.lt.s32.totalorder %s1423_s13, %s993_s19 }
  0x33   : > { %p990_p12 = pnand %p989_p11, %p1154_p4  ;;  %p996_p1 = scmp.lt.s32.totalorder %s994_s20, %s988_s17 }
  0x35   : > { %383 = vperm.xlu0 %971, %v349_v4   ;;  %378 = vperm.xlu1 %972, %v348_v13   ;;  %p991_p13 = pneg %p990_p12  ;;  %p997_p2 = por %p996_p1, %p995_p0 }
  0x37   : > { %p998_p3 = pnand %p997_p2, %p991_p13 }
  0x39   : > { %393 = vperm.xlu0 %971, %v351_v5   ;;  %388 = vperm.xlu1 %972, %v350_v14  }
  0x3d   : > { %403 = vperm.xlu0 %971, %v353_v7   ;;  %398 = vperm.xlu1 %972, %v352_v15  }
  0x41   : > { %413 = vperm.xlu0 %971, %v355_v8   ;;  %408 = vperm.xlu1 %972, %v354_v16  }
  0x45   : > { %423 = vperm.xlu0 %971, %v357_v9   ;;  %418 = vperm.xlu1 %972, %v356_v17  }
  0x49   : > { %433 = vperm.xlu0 %971, %v359_v10   ;;  %428 = vperm.xlu1 %972, %v358_v18  }
  0x4d   : > { %438 = vperm.xlu1 %972, %v360_v19  }
  0xa8   : > { %v301_v26 = vpop.permute.xlu0 %300 }
  0xa9   : > { %v308_v27 = vrot.slane %v301_v26, %v307_v25 }
  0xab   : > { %v310_v30 = vmul.f32 %v308_v27, %v295_v28 }
  0xac   : > { %v315_v29 = vpop.permute.xlu0 %314  ;;  %v364_v53 = vpop.permute.xlu1 %363 }
  0xad   : > { %v322_v31 = vrot.slane %v315_v29, %v307_v25 }
  0xaf   : > { %v324_v33 = vadd.f32 %v322_v31, %v310_v30 }
  0xb0   : > { %v369_v54 = vpop.permute.xlu1 %368  ;;  %v374_v55 = vpop.permute.xlu0 %373 }
  0xb1   : > { %v326_v34 = vmul.f32 %v325_v32, %v324_v33 }
  0xb3   : > { %v327_v35 = vmax.f32 %v324_v33, %v326_v34 }
  0xb4   : > { %v1329_v56 = vpop.permute.xlu1 %378  ;;  %v1331_v57 = vpop.permute.xlu0 %383 }
  0xb5   : > { %v442_v36 = vcombine.high %v327_v35, %v327_v35 }
  0xb7   : > { %873 = vmatprep.subr.msk.mxu0 %vm492_vm0, %v442_v36  ;;  %898 = vmatprep.subr.msk.mxu1 %vm492_vm0, %v442_v36 }
  0xb8   : > { %874 = vmatpush1.msk.msra.mxu0 %vm492_vm0, %v327_v35  ;;  %899 = vmatpush1.msk.msra.mxu1 %vm492_vm0, %v327_v35  ;;  %v1333_v58 = vpop.permute.xlu1 %388  ;;  %v1335_v59 = vpop.permute.xlu0 %393 }
  0xb9   : > { %875 = vmatmul.mubr.msk.f32.vlgmr.msra.gmra.mrb[0].mxu0 %vm443_vm1, %v329_v37  ;;  %883 = vmatmul.mubr.msk.f32.vlgmr.msra.gmra.mrb[0].mxu1 %vm443_vm1, %v337_v38 }
  0xba   : > { %567 = vmatprep.mubr.f32.mxu0 %v1074_v6  ;;  %615 = vmatprep.mubr.f32.mxu1 %v1074_v6 }
  0xbc   : > { %v1337_v60 = vpop.permute.xlu1 %398  ;;  %v404_v61 = vpop.permute.xlu0 %403 }
  0xbd   : > { %876 = vmatmul.mubr.msk.f32.gmra.mrb[2].mxu0 %vm443_vm1, %v330_v39  ;;  %884 = vmatmul.mubr.msk.f32.gmra.mrb[2].mxu1 %vm443_vm1, %v338_v40 }
  0xbe   : > { %573 = vmatprep.mubr.f32.mxu0 %v1074_v6  ;;  %621 = vmatprep.mubr.f32.mxu1 %v1074_v6 }
  0xc0   : > { %v409_v7 = vpop.permute.xlu1 %408  ;;  %v414_v24 = vpop.permute.xlu0 %413 }
  0xc1   : > { %877 = vmatmul.mubr.msk.f32.gmra.mrb[4].mxu0 %vm443_vm1, %v331_v41  ;;  %885 = vmatmul.mubr.msk.f32.gmra.mrb[4].mxu1 %vm443_vm1, %v339_v42 }
  0xc2   : > { %579 = vmatprep.mubr.f32.mxu0 %v1074_v6  ;;  %627 = vmatprep.mubr.f32.mxu1 %v1074_v6 }
  0xc4   : > { %v419_v41 = vpop.permute.xlu1 %418 }
  0xc5   : > { %878 = vmatmul.mubr.msk.f32.gmra.mrb[6].mxu0 %vm443_vm1, %v332_v43  ;;  %886 = vmatmul.mubr.msk.f32.gmra.mrb[6].mxu1 %vm443_vm1, %v340_v44 }
  0xc6   : > { %585 = vmatprep.mubr.f32.mxu0 %v1074_v6  ;;  %633 = vmatprep.mubr.f32.mxu1 %v1074_v6 }
  0xc9   : > { %879 = vmatmul.mubr.msk.f32.gmra.mrb[8].mxu0 %vm443_vm1, %v333_v45  ;;  %887 = vmatmul.mubr.msk.f32.gmra.mrb[8].mxu1 %vm443_vm1, %v341_v46 }
  0xca   : > { %591 = vmatprep.mubr.f32.mxu0 %v1074_v6  ;;  %639 = vmatprep.mubr.f32.mxu1 %v1074_v6 }
  0xcd   : > { %880 = vmatmul.mubr.msk.f32.gmra.mrb[10].mxu0 %vm443_vm1, %v334_v47  ;;  %888 = vmatmul.mubr.msk.f32.gmra.mrb[10].mxu1 %vm443_vm1, %v342_v48 }
  0xce   : > { %597 = vmatprep.mubr.f32.mxu0 %v1074_v6  ;;  %645 = vmatprep.mubr.f32.mxu1 %v1074_v6 }
  0xd1   : > { %881 = vmatmul.mubr.msk.f32.gmra.mrb[12].mxu0 %vm443_vm1, %v335_v49  ;;  %889 = vmatmul.mubr.msk.f32.gmra.mrb[12].mxu1 %vm443_vm1, %v343_v50 }
  0xd2   : > { %603 = vmatprep.mubr.f32.mxu0 %v1074_v6  ;;  %651 = vmatprep.mubr.f32.mxu1 %v1074_v6 }
  0xd5   : > { %882 = vmatmul.mubr.msk.f32.gmra.mrb[14].mxu0 %vm443_vm1, %v336_v51  ;;  %890 = vmatmul.mubr.msk.f32.gmra.mrb[14].mxu1 %vm443_vm1, %v344_v52 }
 0x18c   : > { %v563_v62 = vpop.f32.mrb[0].mxu0  ;;  %v611_v0 = vpop.f32.mrb[0].mxu1 }
 0x18d   : > { %v564_v1 = vadd.f32 %v563_v62, %v364_v53  ;;  %v612_v2 = vadd.f32 %v611_v0, %v404_v61  ;;  %v565_v3 = vpop.f32.mrb[1].mxu0  ;;  %v613_v4 = vpop.f32.mrb[1].mxu1 }
 0x18e   : > { %v566_v5 = vadd.f32 %v565_v3, %v364_v53  ;;  %v614_v6 = vadd.f32 %v613_v4, %v404_v61  ;;  %v424_v0 = vpop.permute.xlu0 %423 }
 0x18f   : > { %v659_v8 = vmul.f32 %v1340_v63, %v564_v1  ;;  %v675_v9 = vmul.f32 %v1340_v63, %v612_v2 }
 0x190   : > { %v660_v10 = vmul.f32 %v1340_v63, %v566_v5  ;;  %v676_v11 = vmul.f32 %v1340_v63, %v614_v6  ;;  %v569_v12 = vpop.f32.mrb[2].mxu0  ;;  %v617_v13 = vpop.f32.mrb[2].mxu1 }
 0x191   : > { %v691_v14 = vmax.f32 %v564_v1, %v659_v8  ;;  %v707_v15 = vmax.f32 %v612_v2, %v675_v9  ;;  %v570_v16 = vadd.f32 %v569_v12, %v369_v54  ;;  %v618_v17 = vadd.f32 %v617_v13, %v409_v7  ;;  %v571_v18 = vpop.f32.mrb[3].mxu0  ;;  %v619_v19 = vpop.f32.mrb[3].mxu1 }
 0x192   : > { %v692_v20 = vmax.f32 %v566_v5, %v660_v10  ;;  %v708_v21 = vmax.f32 %v614_v6, %v676_v11  ;;  %v572_v22 = vadd.f32 %v571_v18, %v369_v54  ;;  %v620_v23 = vadd.f32 %v619_v19, %v409_v7 }
 0x193   : > { %723 = vst [vmem:[%s1348_s11] sm:$0xff] %v691_v14  ;;  %739 = vst [vmem:[%s1348_s11 + $0x80] sm:$0xff] %v707_v15  ;;  %v661_v25 = vmul.f32 %v1340_v63, %v570_v16  ;;  %v677_v26 = vmul.f32 %v1340_v63, %v618_v17 }
 0x194   : > { %724 = vst [vmem:[%s1348_s11 + $0x8] sm:$0xff] %v692_v20  ;;  %740 = vst [vmem:[%s1348_s11 + $0x88] sm:$0xff] %v708_v21  ;;  %v662_v27 = vmul.f32 %v1340_v63, %v572_v22  ;;  %v678_v28 = vmul.f32 %v1340_v63, %v620_v23  ;;  %v575_v29 = vpop.f32.mrb[4].mxu0  ;;  %v623_v30 = vpop.f32.mrb[4].mxu1 }
 0x195   : > { %v693_v31 = vmax.f32 %v570_v16, %v661_v25  ;;  %v709_v32 = vmax.f32 %v618_v17, %v677_v26  ;;  %v576_v33 = vadd.f32 %v575_v29, %v374_v55  ;;  %v624_v34 = vadd.f32 %v623_v30, %v414_v24  ;;  %v577_v35 = vpop.f32.mrb[5].mxu0  ;;  %v625_v36 = vpop.f32.mrb[5].mxu1 }
 0x196   : > { %v694_v37 = vmax.f32 %v572_v22, %v662_v27  ;;  %v710_v38 = vmax.f32 %v620_v23, %v678_v28  ;;  %v578_v39 = vadd.f32 %v577_v35, %v374_v55  ;;  %v626_v40 = vadd.f32 %v625_v36, %v414_v24  ;;  %v429_v16 = vpop.permute.xlu1 %428 }
 0x197   : > { %725 = vst [vmem:[%s1348_s11 + $0x10] sm:$0xff] %v693_v31  ;;  %741 = vst [vmem:[%s1348_s11 + $0x90] sm:$0xff] %v709_v32  ;;  %v663_v42 = vmul.f32 %v1340_v63, %v576_v33  ;;  %v679_v43 = vmul.f32 %v1340_v63, %v624_v34  ;;  %v434_v32 = vpop.permute.xlu0 %433 }
 0x198   : > { %726 = vst [vmem:[%s1348_s11 + $0x18] sm:$0xff] %v694_v37  ;;  %742 = vst [vmem:[%s1348_s11 + $0x98] sm:$0xff] %v710_v38  ;;  %v664_v44 = vmul.f32 %v1340_v63, %v578_v39  ;;  %v680_v45 = vmul.f32 %v1340_v63, %v626_v40  ;;  %v581_v46 = vpop.f32.mrb[6].mxu0  ;;  %v629_v47 = vpop.f32.mrb[6].mxu1 }
 0x199   : > { %v695_v48 = vmax.f32 %v576_v33, %v663_v42  ;;  %v711_v49 = vmax.f32 %v624_v34, %v679_v43  ;;  %v582_v50 = vadd.f32 %v581_v46, %v1329_v56  ;;  %v630_v51 = vadd.f32 %v629_v47, %v419_v41  ;;  %v583_v52 = vpop.f32.mrb[7].mxu0  ;;  %v631_v53 = vpop.f32.mrb[7].mxu1 }
 0x19a   : > { %v696_v54 = vmax.f32 %v578_v39, %v664_v44  ;;  %v712_v55 = vmax.f32 %v626_v40, %v680_v45  ;;  %v584_v61 = vadd.f32 %v583_v52, %v1329_v56  ;;  %v632_v62 = vadd.f32 %v631_v53, %v419_v41 }
 0x19b   : > { %727 = vst [vmem:[%s1348_s11 + $0x20] sm:$0xff] %v695_v48  ;;  %743 = vst [vmem:[%s1348_s11 + $0xa0] sm:$0xff] %v711_v49  ;;  %v665_v1 = vmul.f32 %v1340_v63, %v582_v50  ;;  %v681_v2 = vmul.f32 %v1340_v63, %v630_v51  ;;  %v439_v48 = vpop.permute.xlu1 %438 }
 0x19c   : > { %728 = vst [vmem:[%s1348_s11 + $0x28] sm:$0xff] %v696_v54  ;;  %744 = vst [vmem:[%s1348_s11 + $0xa8] sm:$0xff] %v712_v55  ;;  %v666_v3 = vmul.f32 %v1340_v63, %v584_v61  ;;  %v682_v4 = vmul.f32 %v1340_v63, %v632_v62  ;;  %v587_v5 = vpop.f32.mrb[8].mxu0  ;;  %v635_v6 = vpop.f32.mrb[8].mxu1 }
 0x19d   : > { %v697_v56 = vmax.f32 %v582_v50, %v665_v1  ;;  %v713_v7 = vmax.f32 %v630_v51, %v681_v2  ;;  %v588_v8 = vadd.f32 %v587_v5, %v1331_v57  ;;  %v636_v9 = vadd.f32 %v635_v6, %v424_v0  ;;  %v589_v10 = vpop.f32.mrb[9].mxu0  ;;  %v637_v11 = vpop.f32.mrb[9].mxu1 }
 0x19e   : > { %v698_v12 = vmax.f32 %v584_v61, %v666_v3  ;;  %v714_v13 = vmax.f32 %v632_v62, %v682_v4  ;;  %v590_v14 = vadd.f32 %v589_v10, %v1331_v57  ;;  %v638_v15 = vadd.f32 %v637_v11, %v424_v0 }
 0x19f   : > { %729 = vst [vmem:[%s1348_s11 + $0x30] sm:$0xff] %v697_v56  ;;  %745 = vst [vmem:[%s1348_s11 + $0xb0] sm:$0xff] %v713_v7  ;;  %v667_v17 = vmul.f32 %v1340_v63, %v588_v8  ;;  %v683_v18 = vmul.f32 %v1340_v63, %v636_v9 }
 0x1a0   : > { %730 = vst [vmem:[%s1348_s11 + $0x38] sm:$0xff] %v698_v12  ;;  %746 = vst [vmem:[%s1348_s11 + $0xb8] sm:$0xff] %v714_v13  ;;  %v668_v19 = vmul.f32 %v1340_v63, %v590_v14  ;;  %v684_v20 = vmul.f32 %v1340_v63, %v638_v15  ;;  %v593_v21 = vpop.f32.mrb[10].mxu0  ;;  %v641_v22 = vpop.f32.mrb[10].mxu1 }
 0x1a1   : > { %v699_v57 = vmax.f32 %v588_v8, %v667_v17  ;;  %v715_v23 = vmax.f32 %v636_v9, %v683_v18  ;;  %v594_v24 = vadd.f32 %v593_v21, %v1333_v58  ;;  %v642_v25 = vadd.f32 %v641_v22, %v429_v16  ;;  %v595_v26 = vpop.f32.mrb[11].mxu0  ;;  %v643_v27 = vpop.f32.mrb[11].mxu1 }
 0x1a2   : > { %v700_v28 = vmax.f32 %v590_v14, %v668_v19  ;;  %v716_v29 = vmax.f32 %v638_v15, %v684_v20  ;;  %v596_v30 = vadd.f32 %v595_v26, %v1333_v58  ;;  %v644_v31 = vadd.f32 %v643_v27, %v429_v16 }
 0x1a3   : > { %731 = vst [vmem:[%s1348_s11 + $0x40] sm:$0xff] %v699_v57  ;;  %747 = vst [vmem:[%s1348_s11 + $0xc0] sm:$0xff] %v715_v23  ;;  %v669_v33 = vmul.f32 %v1340_v63, %v594_v24  ;;  %v685_v34 = vmul.f32 %v1340_v63, %v642_v25 }
 0x1a4   : > { %732 = vst [vmem:[%s1348_s11 + $0x48] sm:$0xff] %v700_v28  ;;  %748 = vst [vmem:[%s1348_s11 + $0xc8] sm:$0xff] %v716_v29  ;;  %v670_v35 = vmul.f32 %v1340_v63, %v596_v30  ;;  %v686_v36 = vmul.f32 %v1340_v63, %v644_v31  ;;  %v599_v37 = vpop.f32.mrb[12].mxu0  ;;  %v647_v38 = vpop.f32.mrb[12].mxu1 }
 0x1a5   : > { %v701_v58 = vmax.f32 %v594_v24, %v669_v33  ;;  %v717_v39 = vmax.f32 %v642_v25, %v685_v34  ;;  %v600_v40 = vadd.f32 %v599_v37, %v1335_v59  ;;  %v648_v41 = vadd.f32 %v647_v38, %v434_v32  ;;  %v601_v42 = vpop.f32.mrb[13].mxu0  ;;  %v649_v43 = vpop.f32.mrb[13].mxu1 }
 0x1a6   : > { %v702_v44 = vmax.f32 %v596_v30, %v670_v35  ;;  %v718_v45 = vmax.f32 %v644_v31, %v686_v36  ;;  %v602_v46 = vadd.f32 %v601_v42, %v1335_v59  ;;  %v650_v47 = vadd.f32 %v649_v43, %v434_v32 }
 0x1a7   : > { %733 = vst [vmem:[%s1348_s11 + $0x50] sm:$0xff] %v701_v58  ;;  %749 = vst [vmem:[%s1348_s11 + $0xd0] sm:$0xff] %v717_v39  ;;  %v671_v49 = vmul.f32 %v1340_v63, %v600_v40  ;;  %v687_v50 = vmul.f32 %v1340_v63, %v648_v41 }
 0x1a8   : > { %734 = vst [vmem:[%s1348_s11 + $0x58] sm:$0xff] %v702_v44  ;;  %750 = vst [vmem:[%s1348_s11 + $0xd8] sm:$0xff] %v718_v45  ;;  %v672_v51 = vmul.f32 %v1340_v63, %v602_v46  ;;  %v688_v52 = vmul.f32 %v1340_v63, %v650_v47  ;;  %v605_v53 = vpop.f32.mrb[14].mxu0  ;;  %v653_v59 = vpop.f32.mrb[14].mxu1 }
 0x1a9   : > { %v703_v54 = vmax.f32 %v600_v40, %v671_v49  ;;  %v719_v55 = vmax.f32 %v648_v41, %v687_v50  ;;  %v606_v61 = vadd.f32 %v605_v53, %v1337_v60  ;;  %v654_v62 = vadd.f32 %v653_v59, %v439_v48  ;;  %v607_v0 = vpop.f32.mrb[15].mxu0  ;;  %v655_v1 = vpop.f32.mrb[15].mxu1 }
 0x1aa   : > { %v704_v2 = vmax.f32 %v602_v46, %v672_v51  ;;  %v720_v3 = vmax.f32 %v650_v47, %v688_v52  ;;  %v608_v4 = vadd.f32 %v607_v0, %v1337_v60  ;;  %v656_v5 = vadd.f32 %v655_v1, %v439_v48 }
 0x1ab   : > { %735 = vst [vmem:[%s1348_s11 + $0x60] sm:$0xff] %v703_v54  ;;  %751 = vst [vmem:[%s1348_s11 + $0xe0] sm:$0xff] %v719_v55  ;;  %v673_v6 = vmul.f32 %v1340_v63, %v606_v61  ;;  %v689_v56 = vmul.f32 %v1340_v63, %v654_v62 }
 0x1ac   : > { %736 = vst [vmem:[%s1348_s11 + $0x68] sm:$0xff] %v704_v2  ;;  %752 = vst [vmem:[%s1348_s11 + $0xe8] sm:$0xff] %v720_v3  ;;  %v674_v7 = vmul.f32 %v1340_v63, %v608_v4  ;;  %v690_v60 = vmul.f32 %v1340_v63, %v656_v5 }
 0x1ad   : > { %v705_v8 = vmax.f32 %v606_v61, %v673_v6  ;;  %v721_v9 = vmax.f32 %v654_v62, %v689_v56 }
 0x1ae   : > { %v706_v10 = vmax.f32 %v608_v4, %v674_v7  ;;  %v722_v11 = vmax.f32 %v656_v5, %v690_v60 }
 0x1af   : > { %737 = vst [vmem:[%s1348_s11 + $0x70] sm:$0xff] %v705_v8  ;;  %753 = vst [vmem:[%s1348_s11 + $0xf0] sm:$0xff] %v721_v9 }
 0x1b0   : > { %738 = vst [vmem:[%s1348_s11 + $0x78] sm:$0xff] %v706_v10  ;;  %754 = vst [vmem:[%s1348_s11 + $0xf8] sm:$0xff] %v722_v11 }
 0x1b1   : > { %1001 = shalt.err (!%p998_p3)
}
 0x1b2   : > { %s1002_s27 = scalar_lea.hbm %s1421_s15, 4096  ;;  %s1006_s8 = scalar_lea.hbm %s1483_s6, 8192 }
 0x1b3   : > { %p1003_p5 = scmp.ne.s32.totalorder %s1421_s15, %s1002_s27  ;;  %p1007_p9 = scmp.lt.u32.totalorder %s1421_s15, %s1483_s6 }
 0x1b4   : > { %p1008_p10 = scmp.lt.u32.totalorder %s1006_s8, %s1002_s27  ;;  %p1010_p12 = scmp.lt.u32.totalorder %s1002_s27, %s1421_s15 }
 0x1b5   : > { %p1004_p6 = pnand %p1003_p5, %p1154_p4 }
 0x1b6   : > { %p1009_p11 = por %p1008_p10, %p1007_p9 }
 0x1b7   : > { %p1005_p7 = pneg %p1004_p6 }
 0x1b8   : > { %p1011_p13 = por %p1010_p12, %p1009_p11 }
 0x1ba   : > { %p1012_p0 = pnand %p1011_p13, %p1005_p7 }
 0x1bc   : > { %1015 = shalt.err (!%p1012_p0)
}
 0x1bd   : > { %s1077_s24 = smov 256   ;;  %s1078_s14 = smov 16  }
 0x1be   : > { %904 = dma.vmem_to_hbm [thread:$0]  (%p1154_p4), %s1423_s13, 4096, %s1421_s15, %s1431_s16, %s1077_s24, %s1077_s24, %s1078_s14  }
 0x1bf PF: > { %p916_p1 = scmp.ge.s32.totalorder %s1070_s26, 2  ;;  %s786_s17 = sand.u32 1, %s1050_s21  }
 0x1c0   : > { %s787_s18 = scalar_lea.sflag [#allocation3], %s786_s17 }
 0x1c1   : > { %p911_p2 = pnand %p916_p1, %p1161_p8 }
 0x1c3   : > { %1045 = dma.done.wait (!%p911_p2), %s787_s18, 4096  }
 0x1c4   : > { %1047 = vsyncadd (!%p911_p2), %s787_s18, 4294963200  ;;  %s20_s26 = sadd.s32 1, %s1070_s26   ;;  %s1488_s21 = smov %s1054_s22 }
 0x1c5   : > { %p17_p3 = scmp.ge.s32.totalorder %s20_s26, 4   ;;  %s1489_s22 = smov %s1058_s23 }
 0x1c6   : > { %s1490_s23 = smov %s1167_s10  ;;  %s1491_s24 = smov %s1066_s25 }
 0x1c7   : > { %s1492_s25 = smov %s1494_s29  ;;  %19 = sbr.rel (!%p17_p3) target bundleno = 5 (0x5), region = 84 }
 0x1ce   :  { %792 = vsyncpa [#allocation3], 1 }
 0x1cf   :  { %794 = vsyncpa [#allocation3 + $0x1], 1 }
 0x1d0   :  { %795 = vsyncpa [#allocation4], 1 }
 0x1d1   :  { %797 = vsyncpa [#allocation4 + $0x1], 1 }

</bundles_post_ra>
